<compile_context>
chip_gen: v5e
topology: v5e:2x2
jax: 0.10.0
libtpu: 0.0.40
codegen_flags: <defaults>
</compile_context>

<pallas_src>
import jax
import jax.numpy as jnp
from jax.experimental import pallas as pl
from jax.experimental.pallas import tpu as pltpu


def _make_kernel(B, H, W):
    """Build the kernel with static batch-block / spatial sizes closed over."""

    def kernel(x_ref, pcat_ref, eh_ref, ew_ref,
               w1_ref, b1_ref, wh_ref, bh_ref, ww_ref, bw_ref,
               out_ref):
        # x_ref block: (B, C, L) with L = H*W on lanes (lane-dense load/store).
        pcat = pcat_ref[...]      # (L, H+W) combined mean-pool matrix
        eh = eh_ref[...]          # (H, L)   broadcast-over-W expansion matrix
        ew = ew_ref[...]          # (W, L)   broadcast-over-H expansion matrix
        w1 = w1_ref[...]          # (mip, C) conv1 weight with BN folded in
        b1 = b1_ref[...]          # (mip, 1) conv1 bias   with BN folded in
        wh = wh_ref[...]          # (C, mip)
        bh = bh_ref[...]          # (C, 1)
        ww = ww_ref[...]          # (C, mip)
        bw = bw_ref[...]          # (C, 1)

        for b in range(B):        # B is a small, static unroll factor
            xb = x_ref[b].astype(jnp.float32)                              # (C, L)

            # Both adaptive average pools as ONE lane-dense MXU matmul
            # (columns [0:H] = mean over W, columns [H:H+W] = mean over H),
            # exactly the torch concat([x_h, x_w], dim=2) descriptor.
            pooled = jnp.dot(xb, pcat, preferred_element_type=jnp.float32)  # (C, H+W)

            # conv1 (1x1) + folded eval-mode BN on the concatenated descriptor.
            y = jnp.dot(w1, pooled, preferred_element_type=jnp.float32) + b1  # (mip, H+W)

            # h_swish: x * relu6(x + 3) / 6
            y = y * jnp.clip(y + 3.0, 0.0, 6.0) * (1.0 / 6.0)

            # split back into the H- and W-descriptors (tiny static lane slices)
            y_h = y[:, :H]                                                 # (mip, H)
            y_w = y[:, H:]                                                 # (mip, W)

            # conv_h / conv_w (1x1) + sigmoid
            a_h = jax.nn.sigmoid(
                jnp.dot(wh, y_h, preferred_element_type=jnp.float32) + bh)  # (C, H)
            a_w = jax.nn.sigmoid(
                jnp.dot(ww, y_w, preferred_element_type=jnp.float32) + bw)  # (C, W)

            # Expand the 1-D gates back to the lane-dense (C, L) layout via the
            # MXU (no lane<->sublane relayout), fused multiply, unmasked store.
            gate = (jnp.dot(a_h, eh, preferred_element_type=jnp.float32) *
                    jnp.dot(a_w, ew, preferred_element_type=jnp.float32))   # (C, L)
            out_ref[b] = (xb * gate).astype(out_ref.dtype)

    return kernel


def _pool_expand_matrices(H, W):
    """Constant matrices that implement pooling / gate-broadcast as matmuls."""
    L = H * W
    l_idx = jnp.arange(L, dtype=jnp.int32)
    # eh[h, l] = 1 iff l // W == h ; ew[w, l] = 1 iff l % W == w
    eh = (l_idx[None, :] // W == jnp.arange(H, dtype=jnp.int32)[:, None]
          ).astype(jnp.float32)                                   # (H, L)
    ew = (l_idx[None, :] % W == jnp.arange(W, dtype=jnp.int32)[:, None]
          ).astype(jnp.float32)                                   # (W, L)
    # Combined pooling matrix: [mean over W | mean over H]  -> (L, H+W)
    pcat = jnp.concatenate([jnp.transpose(eh) * (1.0 / W),
                            jnp.transpose(ew) * (1.0 / H)], axis=1)
    return pcat, eh, ew


def _choose_batch_block(N, C, L, itemsize, budget_bytes=8 << 20):
    """Images per grid step that fit the working set in a VMEM budget."""
    image_bytes = C * L * itemsize
    # double-buffered input + output blocks, plus two f32 temps (xb, gate)
    per_image = 4 * image_bytes + 2 * C * L * 4
    max_b = max(1, budget_bytes // per_image)
    if N >= 2:
        # Keep >= 2 grid steps so both v7x TensorCores get work
        # (harmless on single-TC v5e / v6e).
        max_b = max(1, min(max_b, N // 2))
    b = 1
    for d in range(1, N + 1):
        if N % d == 0 and d <= max_b:
            b = d
    return b


def coord_att(x, params):
    """x: (N, C, H, W) float. params: dict of weights (see init_params)."""
    N, C, H, W = x.shape
    L = H * W
    mip = params["w1"].shape[0]
    oup = params["wh"].shape[0]
    assert oup == C, "broadcast in `identity * a_w * a_h` requires oup == inp"

    # Fold eval-mode BatchNorm into conv1 (affine o affine -> affine).
    inv = jax.lax.rsqrt(params["var"] + 1e-5)                        # (mip, 1)
    scale = params["gamma"] * inv                                    # (mip, 1)
    w1_f = scale * params["w1"]                                      # (mip, C)
    b1_f = scale * (params["b1"] - params["mean"]) + params["beta"]  # (mip, 1)

    pcat, eh, ew = _pool_expand_matrices(H, W)

    # Lane-dense presentation: free, contiguous reshape in the wrapper.
    x2 = x.reshape(N, C, L)

    B = _choose_batch_block(N, C, L, x.dtype.itemsize)
    grid = (N // B,)

    def full_spec(shape):
        nd = len(shape)
        return pl.BlockSpec(shape, lambda n, _nd=nd: (0,) * _nd)

    in_specs = [
        pl.BlockSpec((B, C, L), lambda n: (n, 0, 0)),   # x (lane-dense)
        full_spec((L, H + W)),    # combined pooling matrix
        full_spec((H, L)),        # Eh (expand over W)
        full_spec((W, L)),        # Ew (expand over H)
        full_spec((mip, C)),      # w1 (BN folded)
        full_spec((mip, 1)),      # b1 (BN folded)
        full_spec((oup, mip)),    # wh
        full_spec((oup, 1)),      # bh
        full_spec((oup, mip)),    # ww
        full_spec((oup, 1)),      # bw
    ]

    out = pl.pallas_call(
        _make_kernel(B, H, W),
        out_shape=jax.ShapeDtypeStruct((N, C, L), x.dtype),
        grid_spec=pltpu.PrefetchScalarGridSpec(
            num_scalar_prefetch=0,
            grid=grid,
            in_specs=in_specs,
            out_specs=pl.BlockSpec((B, C, L), lambda n: (n, 0, 0)),
        ),
        compiler_params=pltpu.CompilerParams(
            dimension_semantics=("parallel",),
            vmem_limit_bytes=48 * 1024 * 1024,
        ),
    )(x2, pcat, eh, ew, w1_f, b1_f,
      params["wh"], params["bh"], params["ww"], params["bw"])

    return out.reshape(N, C, H, W)


def init_params(inp, oup, reduction=8):
    """Deterministic synthetic parameters matching CoordAtt.__init__ shapes."""
    mip = max(8, inp // reduction)
    keys = jax.random.split(jax.random.PRNGKey(42), 6)
    p = {
        # conv1: Conv2d(inp, mip, 1) -> weight (mip, inp), bias (mip, 1)
        "w1": jax.random.normal(keys[0], (mip, inp), jnp.float32) * 0.1,
        "b1": jax.random.normal(keys[1], (mip, 1), jnp.float32) * 0.1,
        # bn1: BatchNorm2d(mip), eval-mode running stats
        "gamma": jnp.ones((mip, 1), jnp.float32),
        "beta": jnp.zeros((mip, 1), jnp.float32),
        "mean": jnp.zeros((mip, 1), jnp.float32),
        "var": jnp.ones((mip, 1), jnp.float32),
        # conv_h / conv_w: Conv2d(mip, oup, 1)
        "wh": jax.random.normal(keys[2], (oup, mip), jnp.float32) * 0.1,
        "bh": jax.random.normal(keys[3], (oup, 1), jnp.float32) * 0.1,
        "ww": jax.random.normal(keys[4], (oup, mip), jnp.float32) * 0.1,
        "bw": jax.random.normal(keys[5], (oup, 1), jnp.float32) * 0.1,
    }
    return p


def coord_att_reference(x, p):
    """Pure-JAX reference (eval-mode BN, unfused), for correctness check."""
    N, C, H, W = x.shape
    ph = jnp.mean(x, axis=3)                     # (N, C, H)
    pw = jnp.mean(x, axis=2)                     # (N, C, W)
    y = jnp.concatenate([ph, pw], axis=2)        # (N, C, H+W)
    y = jnp.einsum("mc,ncl->nml", p["w1"], y, precision="highest") + p["b1"][None]
    inv = jax.lax.rsqrt(p["var"][None] + 1e-5)
    y = (y - p["mean"][None]) * inv * p["gamma"][None] + p["beta"][None]
    y = y * jnp.clip(y + 3.0, 0.0, 6.0) / 6.0
    yh, yw = y[:, :, :H], y[:, :, H:]
    a_h = jax.nn.sigmoid(
        jnp.einsum("om,nml->nol", p["wh"], yh, precision="highest") + p["bh"][None])
    a_w = jax.nn.sigmoid(
        jnp.einsum("om,nml->nol", p["ww"], yw, precision="highest") + p["bw"][None])
    return x * a_h[:, :, :, None] * a_w[:, :, None, :]


if __name__ == "__main__":
    N, C, H, W = 2, 4, 16, 16
    x = jax.random.normal(jax.random.PRNGKey(0), (N, C, H, W), jnp.float32)
    params = init_params(inp=C, oup=C, reduction=8)

    out = coord_att(x, params)
    out = jax.block_until_ready(out)

    ref = coord_att_reference(x, params)
    assert out.shape == (N, C, H, W)
    # Tolerance covers possible multi-pass MXU emulation of f32 matmuls; any
    # structural error (wrong pooling / gating / BN fold) would be O(0.1)+.
    assert jnp.allclose(out, ref, atol=1e-2, rtol=1e-2), "mismatch vs reference"

    print("KERNEL_OK")
</pallas_src>

<mosaic_0001>
module attributes {stable_mosaic.version = 11 : i64} {
  func.func @kernel(%arg0: i32, %arg1: memref<1x4x256xf32, #tpu.memory_space<vmem>>, %arg2: memref<256x32xf32, #tpu.memory_space<vmem>>, %arg3: memref<16x256xf32, #tpu.memory_space<vmem>>, %arg4: memref<16x256xf32, #tpu.memory_space<vmem>>, %arg5: memref<8x4xf32, #tpu.memory_space<vmem>>, %arg6: memref<8x1xf32, #tpu.memory_space<vmem>>, %arg7: memref<4x8xf32, #tpu.memory_space<vmem>>, %arg8: memref<4x1xf32, #tpu.memory_space<vmem>>, %arg9: memref<4x8xf32, #tpu.memory_space<vmem>>, %arg10: memref<4x1xf32, #tpu.memory_space<vmem>>, %arg11: memref<1x4x256xf32, #tpu.memory_space<vmem>>) attributes {dimension_semantics = [#tpu.dimension_semantics<parallel>], iteration_bounds = array<i64: 2>, scalar_prefetch = 0 : i64, scratch_operands = 0 : i64, tpu.core_type = #tpu.core_type<tc>, window_params = [{transform_indices = @transform_0, window_bounds = array<i64: 1, 4, 256>}, {pipeline_mode = #tpu.pipeline_mode<synchronous>, transform_indices = @transform_1, window_bounds = array<i64: 256, 32>}, {pipeline_mode = #tpu.pipeline_mode<synchronous>, transform_indices = @transform_2, window_bounds = array<i64: 16, 256>}, {pipeline_mode = #tpu.pipeline_mode<synchronous>, transform_indices = @transform_3, window_bounds = array<i64: 16, 256>}, {pipeline_mode = #tpu.pipeline_mode<synchronous>, transform_indices = @transform_4, window_bounds = array<i64: 8, 4>}, {pipeline_mode = #tpu.pipeline_mode<synchronous>, transform_indices = @transform_5, window_bounds = array<i64: 8, 1>}, {pipeline_mode = #tpu.pipeline_mode<synchronous>, transform_indices = @transform_6, window_bounds = array<i64: 4, 8>}, {pipeline_mode = #tpu.pipeline_mode<synchronous>, transform_indices = @transform_7, window_bounds = array<i64: 4, 1>}, {pipeline_mode = #tpu.pipeline_mode<synchronous>, transform_indices = @transform_8, window_bounds = array<i64: 4, 8>}, {pipeline_mode = #tpu.pipeline_mode<synchronous>, transform_indices = @transform_9, window_bounds = array<i64: 4, 1>}, {transform_indices = @transform_10, window_bounds = array<i64: 1, 4, 256>}]} {
    %c0 = arith.constant 0 : index
    %c0_0 = arith.constant 0 : index
    %0 = vector.load %arg2[%c0, %c0_0] : memref<256x32xf32, #tpu.memory_space<vmem>>, vector<256x32xf32>
    %c0_1 = arith.constant 0 : index
    %c0_2 = arith.constant 0 : index
    %1 = vector.load %arg3[%c0_1, %c0_2] : memref<16x256xf32, #tpu.memory_space<vmem>>, vector<16x256xf32>
    %c0_3 = arith.constant 0 : index
    %c0_4 = arith.constant 0 : index
    %2 = vector.load %arg4[%c0_3, %c0_4] : memref<16x256xf32, #tpu.memory_space<vmem>>, vector<16x256xf32>
    %c0_5 = arith.constant 0 : index
    %c0_6 = arith.constant 0 : index
    %3 = vector.load %arg5[%c0_5, %c0_6] : memref<8x4xf32, #tpu.memory_space<vmem>>, vector<8x4xf32>
    %c0_7 = arith.constant 0 : index
    %c0_8 = arith.constant 0 : index
    %4 = vector.load %arg6[%c0_7, %c0_8] : memref<8x1xf32, #tpu.memory_space<vmem>>, vector<8x1xf32>
    %c0_9 = arith.constant 0 : index
    %c0_10 = arith.constant 0 : index
    %5 = vector.load %arg7[%c0_9, %c0_10] : memref<4x8xf32, #tpu.memory_space<vmem>>, vector<4x8xf32>
    %c0_11 = arith.constant 0 : index
    %c0_12 = arith.constant 0 : index
    %6 = vector.load %arg8[%c0_11, %c0_12] : memref<4x1xf32, #tpu.memory_space<vmem>>, vector<4x1xf32>
    %c0_13 = arith.constant 0 : index
    %c0_14 = arith.constant 0 : index
    %7 = vector.load %arg9[%c0_13, %c0_14] : memref<4x8xf32, #tpu.memory_space<vmem>>, vector<4x8xf32>
    %c0_15 = arith.constant 0 : index
    %c0_16 = arith.constant 0 : index
    %8 = vector.load %arg10[%c0_15, %c0_16] : memref<4x1xf32, #tpu.memory_space<vmem>>, vector<4x1xf32>
    %c0_17 = arith.constant 0 : index
    %c0_18 = arith.constant 0 : index
    %c0_19 = arith.constant 0 : index
    %9 = vector.load %arg1[%c0_17, %c0_18, %c0_19] : memref<1x4x256xf32, #tpu.memory_space<vmem>>, vector<1x4x256xf32>
    %10 = vector.shape_cast %9 : vector<1x4x256xf32> to vector<4x256xf32>
    %cst = arith.constant dense<0.000000e+00> : vector<4x32xf32>
    %11 = tpu.matmul %10, %0, %cst {dimension_numbers = #tpu.dot_dimension_numbers<[1], [0], [0], [1], [0, 0, 1, 1], [], []>} : vector<4x256xf32>, vector<256x32xf32>, vector<4x32xf32> -> vector<4x32xf32>
    %cst_20 = arith.constant dense<0.000000e+00> : vector<8x32xf32>
    %12 = tpu.matmul %3, %11, %cst_20 {dimension_numbers = #tpu.dot_dimension_numbers<[1], [0], [0], [1], [0, 0, 1, 1], [], []>} : vector<8x4xf32>, vector<4x32xf32>, vector<8x32xf32> -> vector<8x32xf32>
    %13 = vector.broadcast %4 : vector<8x1xf32> to vector<8x32xf32>
    %14 = arith.addf %12, %13 : vector<8x32xf32>
    %cst_21 = arith.constant 3.000000e+00 : f32
    %15 = vector.broadcast %cst_21 : f32 to vector<8x32xf32>
    %16 = arith.addf %14, %15 : vector<8x32xf32>
    %cst_22 = arith.constant 0.000000e+00 : f32
    %cst_23 = arith.constant 6.000000e+00 : f32
    %17 = vector.broadcast %cst_22 : f32 to vector<8x32xf32>
    %18 = arith.maximumf %17, %16 : vector<8x32xf32>
    %19 = vector.broadcast %cst_23 : f32 to vector<8x32xf32>
    %20 = arith.minimumf %19, %18 : vector<8x32xf32>
    %21 = arith.mulf %14, %20 : vector<8x32xf32>
    %cst_24 = arith.constant 0.166666672 : f32
    %22 = vector.broadcast %cst_24 : f32 to vector<8x32xf32>
    %23 = arith.mulf %21, %22 : vector<8x32xf32>
    %24 = vector.extract_strided_slice %23 {offsets = [0, 0], sizes = [8, 16], strides = [1, 1]} : vector<8x32xf32> to vector<8x16xf32>
    %25 = vector.extract_strided_slice %23 {offsets = [0, 16], sizes = [8, 16], strides = [1, 1]} : vector<8x32xf32> to vector<8x16xf32>
    %cst_25 = arith.constant dense<0.000000e+00> : vector<4x16xf32>
    %26 = tpu.matmul %5, %24, %cst_25 {dimension_numbers = #tpu.dot_dimension_numbers<[1], [0], [0], [1], [0, 0, 1, 1], [], []>} : vector<4x8xf32>, vector<8x16xf32>, vector<4x16xf32> -> vector<4x16xf32>
    %27 = vector.broadcast %6 : vector<4x1xf32> to vector<4x16xf32>
    %28 = arith.addf %26, %27 : vector<4x16xf32>
    %29 = arith.negf %28 : vector<4x16xf32>
    %30 = math.exp %29 : vector<4x16xf32>
    %cst_26 = arith.constant 1.000000e+00 : f32
    %31 = vector.broadcast %cst_26 : f32 to vector<4x16xf32>
    %32 = arith.addf %31, %30 : vector<4x16xf32>
    %33 = arith.divf %31, %32 : vector<4x16xf32>
    %cst_27 = arith.constant dense<0.000000e+00> : vector<4x16xf32>
    %34 = tpu.matmul %7, %25, %cst_27 {dimension_numbers = #tpu.dot_dimension_numbers<[1], [0], [0], [1], [0, 0, 1, 1], [], []>} : vector<4x8xf32>, vector<8x16xf32>, vector<4x16xf32> -> vector<4x16xf32>
    %35 = vector.broadcast %8 : vector<4x1xf32> to vector<4x16xf32>
    %36 = arith.addf %34, %35 : vector<4x16xf32>
    %37 = arith.negf %36 : vector<4x16xf32>
    %38 = math.exp %37 : vector<4x16xf32>
    %cst_28 = arith.constant 1.000000e+00 : f32
    %39 = vector.broadcast %cst_28 : f32 to vector<4x16xf32>
    %40 = arith.addf %39, %38 : vector<4x16xf32>
    %41 = arith.divf %39, %40 : vector<4x16xf32>
    %cst_29 = arith.constant dense<0.000000e+00> : vector<4x256xf32>
    %42 = tpu.matmul %33, %1, %cst_29 {dimension_numbers = #tpu.dot_dimension_numbers<[1], [0], [0], [1], [0, 0, 1, 1], [], []>} : vector<4x16xf32>, vector<16x256xf32>, vector<4x256xf32> -> vector<4x256xf32>
    %cst_30 = arith.constant dense<0.000000e+00> : vector<4x256xf32>
    %43 = tpu.matmul %41, %2, %cst_30 {dimension_numbers = #tpu.dot_dimension_numbers<[1], [0], [0], [1], [0, 0, 1, 1], [], []>} : vector<4x16xf32>, vector<16x256xf32>, vector<4x256xf32> -> vector<4x256xf32>
    %44 = arith.mulf %42, %43 : vector<4x256xf32>
    %45 = arith.mulf %10, %44 : vector<4x256xf32>
    %c0_31 = arith.constant 0 : index
    %c0_32 = arith.constant 0 : index
    %c0_33 = arith.constant 0 : index
    %46 = vector.load %arg11[%c0_31, %c0_32, %c0_33] : memref<1x4x256xf32, #tpu.memory_space<vmem>>, vector<1x4x256xf32>
    %47 = vector.shape_cast %46 : vector<1x4x256xf32> to vector<4x256xf32>
    %48 = vector.shape_cast %45 : vector<4x256xf32> to vector<1x4x256xf32>
    tpu.vector_store %arg11[%c0_31, %c0_32, %c0_33], %48 {strides = array<i32>} : memref<1x4x256xf32, #tpu.memory_space<vmem>>, vector<1x4x256xf32>,
    return
  }
  func.func @transform_0(%arg0: i32) -> (i32, i32, i32) {
    %c0_i32 = arith.constant 0 : i32
    %c0_i32_0 = arith.constant 0 : i32
    %c0_i32_1 = arith.constant 0 : i32
    return %arg0, %c0_i32, %c0_i32_0 : i32, i32, i32
  }
  func.func @transform_1(%arg0: i32) -> (i32, i32) {
    %c0_i32 = arith.constant 0 : i32
    %c0_i32_0 = arith.constant 0 : i32
    %c0_i32_1 = arith.constant 0 : i32
    return %c0_i32, %c0_i32_0 : i32, i32
  }
  func.func @transform_2(%arg0: i32) -> (i32, i32) {
    %c0_i32 = arith.constant 0 : i32
    %c0_i32_0 = arith.constant 0 : i32
    %c0_i32_1 = arith.constant 0 : i32
    return %c0_i32, %c0_i32_0 : i32, i32
  }
  func.func @transform_3(%arg0: i32) -> (i32, i32) {
    %c0_i32 = arith.constant 0 : i32
    %c0_i32_0 = arith.constant 0 : i32
    %c0_i32_1 = arith.constant 0 : i32
    return %c0_i32, %c0_i32_0 : i32, i32
  }
  func.func @transform_4(%arg0: i32) -> (i32, i32) {
    %c0_i32 = arith.constant 0 : i32
    %c0_i32_0 = arith.constant 0 : i32
    %c0_i32_1 = arith.constant 0 : i32
    return %c0_i32, %c0_i32_0 : i32, i32
  }
  func.func @transform_5(%arg0: i32) -> (i32, i32) {
    %c0_i32 = arith.constant 0 : i32
    %c0_i32_0 = arith.constant 0 : i32
    %c0_i32_1 = arith.constant 0 : i32
    return %c0_i32, %c0_i32_0 : i32, i32
  }
  func.func @transform_6(%arg0: i32) -> (i32, i32) {
    %c0_i32 = arith.constant 0 : i32
    %c0_i32_0 = arith.constant 0 : i32
    %c0_i32_1 = arith.constant 0 : i32
    return %c0_i32, %c0_i32_0 : i32, i32
  }
  func.func @transform_7(%arg0: i32) -> (i32, i32) {
    %c0_i32 = arith.constant 0 : i32
    %c0_i32_0 = arith.constant 0 : i32
    %c0_i32_1 = arith.constant 0 : i32
    return %c0_i32, %c0_i32_0 : i32, i32
  }
  func.func @transform_8(%arg0: i32) -> (i32, i32) {
    %c0_i32 = arith.constant 0 : i32
    %c0_i32_0 = arith.constant 0 : i32
    %c0_i32_1 = arith.constant 0 : i32
    return %c0_i32, %c0_i32_0 : i32, i32
  }
  func.func @transform_9(%arg0: i32) -> (i32, i32) {
    %c0_i32 = arith.constant 0 : i32
    %c0_i32_0 = arith.constant 0 : i32
    %c0_i32_1 = arith.constant 0 : i32
    return %c0_i32, %c0_i32_0 : i32, i32
  }
  func.func @transform_10(%arg0: i32) -> (i32, i32, i32) {
    %c0_i32 = arith.constant 0 : i32
    %c0_i32_0 = arith.constant 0 : i32
    %c0_i32_1 = arith.constant 0 : i32
    return %arg0, %c0_i32, %c0_i32_0 : i32, i32, i32
  }
}

</mosaic_0001>

<bundles_post_ra>
// kernel: tpu_custom_call.1
= control target key start
LH: loop header
LB: loop body
LE: loop exit
PB: predicated region body
PF: predicated region fallthrough
CT: control target
= control target key end

     0   :  { %15 = vsyncpa [#allocation3], 0  ;;  %s1189_s0 = inlined_call_operand.vmem [shape: f32[2,4,256], index: 0, kind: input, shape index: {}]   ;;  %s1190_s1 = inlined_call_operand.vmem [shape: f32[256,32], index: 1, kind: input, shape index: {}]   ;;  %s1191_s2 = inlined_call_operand.vmem [shape: f32[16,256], index: 2, kind: input, shape index: {}]   ;;  %s1192_s3 = inlined_call_operand.vmem [shape: f32[16,256], index: 3, kind: input, shape index: {}]   ;;  %s1193_s4 = inlined_call_operand.vmem [shape: f32[8,4], index: 4, kind: input, shape index: {}]   ;;  %s1194_s5 = inlined_call_operand.vmem [shape: f32[8,1], index: 5, kind: input, shape index: {}]   ;;  %s1195_s6 = inlined_call_operand.vmem [shape: f32[4,8], index: 6, kind: input, shape index: {}]   ;;  %s1196_s7 = inlined_call_operand.vmem [shape: f32[4,1], index: 7, kind: input, shape index: {}]   ;;  %s1197_s8 = inlined_call_operand.vmem [shape: f32[4,8], index: 8, kind: input, shape index: {}]   ;;  %s1198_s9 = inlined_call_operand.vmem [shape: f32[4,1], index: 9, kind: input, shape index: {}]   ;;  %s1199_s10 = inlined_call_operand.hbm [shape: f32[2,4,256], index: 10, kind: output, shape index: {}]  }
   0x1   :  { %17 = vsyncpa [#allocation3 + $0x1], 0  ;;  %s956_s13 = smov 0   ;;  %s958_s14 = smov 0  }
   0x2   :  { %s960_s15 = smov 0   ;;  %s962_s16 = smov 0  }
   0x3 LB: > { %s977_s17 = sadd.s32 4294967295, %s897_s16   ;;  %s760_s18 = sadd.s32 4294967294, %s897_s16   ;;  %s897_s16 = sphi %s962_s16, %s1207_s16   ;;  %s893_s15 = sphi %s960_s15, %s1206_s15   ;;  %s889_s14 = sphi %s958_s14, %s1205_s14   ;;  %s885_s13 = sphi %s956_s13, %s1204_s13  }
   0x4   : > { %s981_s19 = sadd.s32 1, %s897_s16   ;;  %s245_s20 = sadd.s32 1, %s893_s15 }
   0x5   : > { %s242_s21 = ssub.s32 %s897_s16, %s981_s19  ;;  %p255_p0 = scmp.ne.s32.totalorder %s893_s15, %s889_s14 }
   0x6   : > { %p243_p1 = scmp.eq.s32.totalorder %s242_s21, 0  ;;  %p256_p2 = scmp.eq.s32.totalorder %s977_s17, 1 }
   0x7   : > { %p261_p3 = scmp.ne.s32.totalorder %s889_s14, %s885_s13  ;;  %p262_p4 = scmp.eq.s32.totalorder %s760_s18, 1 }
   0x8   : > { %s992_s22 = scalar_select %p243_p1, %s893_s15, %s245_s20  }
   0x9   : > { %p994_p5 = por %p256_p2, %p255_p0  ;;  %p998_p6 = por %p262_p4, %p261_p3 }
   0xa   : > { %1200 = sst [smem:[#allocation5_spill]] %s992_s22  ;;  %p763_p7 = scmp.ge.s32.totalorder %s897_s16, 1 }
   0xb   : > { %p315_p8 = scmp.lt.s32.totalorder %s897_s16, 3 }
   0xd   : > { %p316_p9 = pnand %p763_p7, %p315_p8 }
   0xe   : > { %p353_p10 = scmp.lt.s32.totalorder (!%p316_p9), %s977_s17, 1  ;;  %s783_s30 = sshll.u32 (!%p316_p9), %s977_s17, 3 }
   0xf   : > { %319 = sbr.rel (%p316_p9) target bundleno = 746 (0x2ea), region = 60  ;;  %s696_s20 = scalar_lea.hbm (!%p316_p9), %s1199_s10, %s783_s30 }
  0x14   : > { %v373_v0 = vld [vmem:[%s1190_s1 + $0x78] sm:$0xff]  ;;  %v372_v2 = vld [vmem:[%s1190_s1 + $0x70] sm:$0xff]  ;;  %v371_v4 = vld [vmem:[%s1190_s1 + $0x68] sm:$0xff]  ;;  %s354_s26 = scalar_select %p353_p10, %s977_s17, 1  ;;  %v899_v36 = vmov 0   ;;  %vm460_vm0 = vcmask 1043456  }
  0x15   : > { %v389_v1 = vld [vmem:[%s1190_s1 + $0xf8] sm:$0xff]  ;;  %411 = vmatpush.msra.mxu0 %v373_v0  ;;  %v388_v3 = vld [vmem:[%s1190_s1 + $0xf0] sm:$0xff]  ;;  %v387_v5 = vld [vmem:[%s1190_s1 + $0xe8] sm:$0xff]  ;;  %825 = vset.pattern.permute.xlu0 %v899_v36  ;;  %vm456_vm1 = vcmask 31744   ;;  %vm494_vm2 = vcmask 64512   ;;  %vm588_vm7 = vcmask 130048  }
  0x16   : > { %431 = vmatpush.msra.mxu1 %v389_v1  ;;  %v370_v6 = vld [vmem:[%s1190_s1 + $0x60] sm:$0xff]  ;;  %s782_s11 = sshll.u32 %s354_s26, 3  ;;  %v369_v8 = vld [vmem:[%s1190_s1 + $0x58] sm:$0xff]  ;;  %v368_v10 = vld [vmem:[%s1190_s1 + $0x50] sm:$0xff]  ;;  %826 = vset.pattern.permute.xlu1 %v899_v36  ;;  %s350_s26 = sand.u32 1, %s889_s14  }
  0x17   : > { %412 = vmatpush.msra.mxu0 %v372_v2  ;;  %v386_v7 = vld [vmem:[%s1190_s1 + $0xe0] sm:$0xff]  ;;  %v385_v9 = vld [vmem:[%s1190_s1 + $0xd8] sm:$0xff]  ;;  %s357_s28 = scalar_lea.vmem %s1189_s0, %s782_s11  ;;  %v384_v11 = vld [vmem:[%s1190_s1 + $0xd0] sm:$0xff]  ;;  %s700_s11 = sshll.u32 %s696_s20, 4  ;;  %s701_s11 = int_to_ptr.hbm [resolvable:$true] %s700_s11 }
  0x18   : > { %432 = vmatpush.msra.mxu1 %v388_v3  ;;  %v367_v12 = vld [vmem:[%s1190_s1 + $0x48] sm:$0xff]  ;;  %v1051_v14 = vld [vmem:[%s357_s28] sm:$0xff]  ;;  %v365_v17 = vld [vmem:[%s1190_s1 + $0x38] sm:$0xff]  ;;  %s900_s28 = smov 112   ;;  %s685_s17 = scalar_lea.sflag [#allocation3], %s350_s26 }
  0x19   : > { %413 = vmatpush.msra.mxu0 %v371_v4  ;;  %v383_v13 = vld [vmem:[%s1190_s1 + $0xc8] sm:$0xff]  ;;  %406 = vst [vmem:[#allocation1] ss:$2 sm:$0xff] %v1051_v14  ;;  %v366_v15 = vld [vmem:[%s1190_s1 + $0x40] sm:$0xff]  ;;  %v381_v18 = vld [vmem:[%s1190_s1 + $0xb8] sm:$0xff]  ;;  %s849_s25 = sshra.s32 %s701_s11, 4  ;;  %s850_s25 = int_to_ptr.hbm [resolvable:$true] %s849_s25 }
  0x1a   : > { %433 = vmatpush.msra.mxu1 %v387_v5  ;;  %v382_v16 = vld [vmem:[%s1190_s1 + $0xc0] sm:$0xff]  ;;  %v364_v19 = vld [vmem:[%s1190_s1 + $0x30] sm:$0xff]  ;;  %v363_v21 = vld [vmem:[%s1190_s1 + $0x28] sm:$0xff]  ;;  %s851_s27 = scalar_lea.hbm %s850_s25, 8  ;;  %p856_p0 = scmp.lt.s32.totalorder %s850_s25, %s1199_s10 }
  0x1b   : > { %414 = vmatpush.msra.mxu0 %v370_v6  ;;  %v380_v20 = vld [vmem:[%s1190_s1 + $0xb0] sm:$0xff]  ;;  %v379_v22 = vld [vmem:[%s1190_s1 + $0xa8] sm:$0xff]  ;;  %v362_v23 = vld [vmem:[%s1190_s1 + $0x20] sm:$0xff]  ;;  %p852_p11 = scmp.ne.s32.totalorder %s850_s25, %s851_s27 }
  0x1c   : > { %434 = vmatpush.msra.mxu1 %v386_v7  ;;  %v378_v24 = vld [vmem:[%s1190_s1 + $0xa0] sm:$0xff]  ;;  %v361_v25 = vld [vmem:[%s1190_s1 + $0x18] sm:$0xff]  ;;  %v360_v27 = vld [vmem:[%s1190_s1 + $0x10] sm:$0xff] }
  0x1d   : > { %415 = vmatpush.msra.mxu0 %v369_v8  ;;  %v377_v26 = vld [vmem:[%s1190_s1 + $0x98] sm:$0xff]  ;;  %v376_v28 = vld [vmem:[%s1190_s1 + $0x90] sm:$0xff]  ;;  %v359_v29 = vld [vmem:[%s1190_s1 + $0x8] sm:$0xff]  ;;  %p853_p12 = pnand %p852_p11, %p994_p5 }
  0x1e   : > { %435 = vmatpush.msra.mxu1 %v385_v9  ;;  %v375_v30 = vld [vmem:[%s1190_s1 + $0x88] sm:$0xff]  ;;  %v358_v31 = vld [vmem:[%s1190_s1] sm:$0xff]  ;;  %v392_v1 = vld [vmem:[%s1191_s2 + $0x10] sm:$0xff] }
  0x1f   : > { %416 = vmatpush.msra.mxu0 %v368_v10  ;;  %v374_v32 = vld [vmem:[%s1190_s1 + $0x80] sm:$0xff]  ;;  %v393_v2 = vld [vmem:[%s1191_s2 + $0x18] sm:$0xff]  ;;  %v391_v7 = vld [vmem:[%s1191_s2 + $0x8] sm:$0xff]  ;;  %p854_p13 = pneg %p853_p12 }
  0x20   : > { %436 = vmatpush.msra.mxu1 %v384_v11  ;;  %v407_v33 = vld.sshfl [vmem:[#allocation1] sm:$0xff pattern:$0x75316420]  ;;  %v408_v34 = vld.sshfl [vmem:[#allocation1 + $0x8] sm:$0xff pattern:$0x75316420] }
  0x21   : > { %417 = vmatpush.msra.mxu0 %v367_v12  ;;  %v399_v35 = vld [vmem:[%s1194_s5] sm:$0xff]  ;;  %v396_v10 = vld [vmem:[%s1192_s3 + $0x10] sm:$0xff]  ;;  %v397_v11 = vld [vmem:[%s1192_s3 + $0x18] sm:$0xff] }
  0x22   : > { %437 = vmatpush.msra.mxu1 %v383_v13  ;;  %453 = vperm.xlu0 %825, %v399_v35   ;;  %v398_v40 = vld [vmem:[%s1193_s4] sm:$0xff]  ;;  %v395_v13 = vld [vmem:[%s1192_s3 + $0x8] sm:$0xff] }
  0x23   : > { %418 = vmatpush.msra.mxu0 %v366_v15  ;;  %v400_v49 = vld [vmem:[%s1195_s6] sm:$0xf] }
  0x24   : > { %438 = vmatpush.msra.mxu1 %v382_v16  ;;  %v401_v50 = vld [vmem:[%s1196_s7] sm:$0xf] }
  0x25   : > { %419 = vmatpush.msra.mxu0 %v365_v17  ;;  %491 = vperm.xlu1 %826, %v401_v50   ;;  %v403_v51 = vld [vmem:[%s1198_s9] sm:$0xf] }
  0x26   : > { %439 = vmatpush.msra.mxu1 %v381_v18  ;;  %v402_v52 = vld [vmem:[%s1197_s8] sm:$0xf] }
  0x27   : > { %420 = vmatpush.msra.mxu0 %v364_v19  ;;  %v390_v6 = vld [vmem:[%s1191_s2] sm:$0xff] }
  0x28   : > { %440 = vmatpush.msra.mxu1 %v380_v20  ;;  %v394_v12 = vld [vmem:[%s1192_s3] sm:$0xff] }
  0x29   : > { %421 = vmatpush.msra.mxu0 %v363_v21 }
  0x2a   : > { %441 = vmatpush.msra.mxu1 %v379_v22 }
  0x2b   : > { %422 = vmatpush.msra.mxu0 %v362_v23 }
  0x2c   : > { %442 = vmatpush.msra.mxu1 %v378_v24 }
  0x2d   : > { %423 = vmatpush.msra.mxu0 %v361_v25  ;;  %539 = vperm.xlu1 %826, %v403_v51  }
  0x2e   : > { %443 = vmatpush.msra.mxu1 %v377_v26 }
  0x2f   : > { %424 = vmatpush.msra.mxu0 %v360_v27 }
  0x30   : > { %444 = vmatpush.msra.mxu1 %v376_v28 }
  0x31   : > { %425 = vmatpush.msra.mxu0 %v359_v29 }
  0x32   : > { %445 = vmatpush.msra.mxu1 %v375_v30 }
  0x33   : > { %426 = vmatpush.msra.mxu0 %v358_v31 }
  0x34   : > { %446 = vmatpush.msra.mxu1 %v374_v32  ;;  %427 = vmatmul.f32.vlgmr.msra.gmra.mxu0 %v407_v33 }
  0x35   : > { %447 = vmatmul.f32.vlgmr.msra.gmra.mxu1 %v408_v34 }
  0x94   : > { %v454_v41 = vpop.permute.xlu0 %453 }
  0x97   : > { %v492_v55 = vpop.permute.xlu1 %491 }
  0x9f   : > { %v540_v15 = vpop.permute.xlu1 %539 }
  0xb1   : > { %v428_v37 = vpop.f32.mrf.mxu0 }
  0xb2   : > { %v448_v38 = vpop.f32.mrf.mxu1 }
  0xb3   : > { %v449_v39 = vadd.f32 %v448_v38, %v428_v37 }
  0xb5   : > { %767 = vmatpush.msk.msra.mxu2 %vm460_vm0, %v449_v39 }
  0xb6   : > { %768 = vmatmul.msk.f32.vlgmr.msra.gmra.mxu2 %vm456_vm1, %v398_v40 }
 0x139   : > { %v481_v42 = vpop.f32.mrf.mxu2 }
 0x13a   : > { %v482_v43 = vadd.f32 %v481_v42, %v454_v41 }
 0x13c   : > { %v484_v44 = vadd.f32 3.0, %v482_v43 }
 0x13e   : > { %v485_v45 = vmax.f32 %v484_v44, 0.0 }
 0x140   : > { %v486_v46 = vmin.f32 %v485_v45, 6.0 }
 0x142   : > { %v487_v47 = vmul.f32 %v486_v46, %v482_v43 }
 0x144   : > { %v488_v48 = vmul.f32 0.16666667, %v487_v47 }
 0x146   : > { %543 = vrot.lane.b32.xlu0 %v488_v48, %s900_s28  ;;  %513 = vmatpush.msra.mxu3 %v488_v48  ;;  %s764_s28 = sshll.u32 %s350_s26, 3 }
 0x147   : > { %769 = vmatmul.msk.f32.vlgmr.msra.gmra.mxu3 %vm494_vm2, %v400_v49  ;;  %s352_s21 = scalar_lea.vmem [#allocation2], %s764_s28  ;;  %s855_s28 = scalar_lea.hbm %s1199_s10, 16 }
 0x148   : > { %606 = vmatpush.msrb.mxu3 %v392_v1  ;;  %s698_s22 = sshll.u32 %s352_s21, 4  ;;  %p857_p1 = scmp.lt.s32.totalorder %s855_s28, %s851_s27  ;;  %s699_s22 = int_to_ptr.vmem [resolvable:$true] %s698_s22 }
 0x14a   : > { %607 = vmatpush.msrb.mxu3 %v390_v6  ;;  %p858_p2 = por %p857_p1, %p856_p0 }
 0x14c   : > { %649 = vmatpush.msra.mxu3 %v396_v10  ;;  %p859_p3 = pnand %p858_p2, %p854_p13 }
 0x14e   : > { %650 = vmatpush.msra.mxu3 %v394_v12 }
 0x1b8   : > { %v544_v53 = vpop.permute.xlu0 %543 }
 0x1b9   : > { %564 = vmatpush.msrb.mxu2 %v544_v53 }
 0x1ba   : > { %771 = vmatmul.msk.f32.vlgmr.msrb.gmra.mxu2 %vm494_vm2, %v402_v52 }
 0x1bb   : > { %626 = vmatpush.msra.mxu2 %v393_v2 }
 0x1bd   : > { %627 = vmatpush.msra.mxu2 %v391_v7 }
 0x1bf   : > { %669 = vmatpush.msrb.mxu2 %v397_v11 }
 0x1c1   : > { %670 = vmatpush.msrb.mxu2 %v395_v13 }
 0x1ca   : > { %v515_v54 = vpop.f32.mrf.mxu3 }
 0x1cb   : > { %v516_v56 = vadd.f32 %v515_v54, %v492_v55 }
 0x1cd   : > { %v770_v57 = vmul.f32 -1.442695, %v516_v56 }
 0x1cf   : > { %827 = vpow2.f32 %v770_v57 }
 0x1d5   : > { %v828_v58 = vpop.eup %827 }
 0x1d6   : > { %v521_v59 = vadd.f32 1.0, %v828_v58 }
 0x1d8   : > { %829 = vrcp.f32 %v521_v59  ;;  %v533_v0 = vand.u32 2147483648, %v521_v59  ;;  %vm527_vm3 = vweird.f32 %v521_v59  ;;  %v531_v4 = vand.u32 2147483647, %v521_v59 }
 0x1da   : > { %v534_v5 = vor.u32 1.1754944e-38, %v533_v0  ;;  %vm532_vm6 = vcmp.eq.f32.partialorder %v531_v4, 8.507059e+37 }
 0x1de   : > { %v830_v60 = vpop.eup %829 }
 0x1df   : > { %v523_v61 = vmul.f32 %v830_v60, %v521_v59  ;;  %vm528_vm4 = vweird.f32 %v830_v60 }
 0x1e0   : > { %vm529_vm5 = vmor %vm527_vm3, %vm528_vm4 }
 0x1e1   : > { %v524_v62 = vsub.f32 1.0, %v523_v61 }
 0x1e3   : > { %v525_v63 = vmul.f32 %v830_v60, %v524_v62 }
 0x1e5   : > { %v526_v3 = vadd.f32 %v830_v60, %v525_v63 }
 0x1e7   : > { %v530_v8 = vsel %vm529_vm5, %v830_v60, %v526_v3 }
 0x1e8   : > { %v535_v9 = vsel %vm532_vm6, %v534_v5, %v530_v8 }
 0x1e9   : > { %773 = vmatmul.msk.f32.vlgmr.msrb.gmra.mxu3 %vm588_vm7, %v535_v9  ;;  %774 = vmatmul.msk.f32.vlgmr.msra.gmra.mxu2 %vm588_vm7, %v535_v9 }
 0x23d   : > { %v566_v16 = vpop.f32.mrf.mxu2 }
 0x23e   : > { %v567_v17 = vadd.f32 %v566_v16, %v540_v15 }
 0x240   : > { %v772_v18 = vmul.f32 -1.442695, %v567_v17 }
 0x242   : > { %831 = vpow2.f32 %v772_v18 }
 0x248   : > { %v832_v19 = vpop.eup %831 }
 0x249   : > { %v572_v20 = vadd.f32 1.0, %v832_v19 }
 0x24b   : > { %833 = vrcp.f32 %v572_v20  ;;  %v584_v24 = vand.u32 2147483648, %v572_v20  ;;  %v582_v26 = vand.u32 2147483647, %v572_v20  ;;  %vm578_vm9 = vweird.f32 %v572_v20 }
 0x24d   : > { %v585_v28 = vor.u32 1.1754944e-38, %v584_v24  ;;  %vm583_vm11 = vcmp.eq.f32.partialorder %v582_v26, 8.507059e+37 }
 0x251   : > { %v834_v21 = vpop.eup %833 }
 0x252   : > { %v574_v22 = vmul.f32 %v834_v21, %v572_v20  ;;  %vm579_vm8 = vweird.f32 %v834_v21 }
 0x253   : > { %vm580_vm10 = vmor %vm578_vm9, %vm579_vm8 }
 0x254   : > { %v575_v23 = vsub.f32 1.0, %v574_v22 }
 0x256   : > { %v576_v25 = vmul.f32 %v834_v21, %v575_v23 }
 0x258   : > { %v577_v27 = vadd.f32 %v834_v21, %v576_v25 }
 0x25a   : > { %v581_v29 = vsel %vm580_vm10, %v834_v21, %v577_v27 }
 0x25b   : > { %v586_v30 = vsel %vm583_vm11, %v585_v28, %v581_v29 }
 0x25c   : > { %775 = vmatmul.msk.f32.vlgmr.msra.gmra.mxu3 %vm588_vm7, %v586_v30  ;;  %776 = vmatmul.msk.f32.vlgmr.msrb.gmra.mxu2 %vm588_vm7, %v586_v30 }
 0x26c   : > { %v609_v31 = vpop.f32.mrf.mxu3  ;;  %v629_v32 = vpop.f32.mrf.mxu2 }
 0x2df   : > { %v652_v33 = vpop.f32.mrf.mxu3  ;;  %v672_v34 = vpop.f32.mrf.mxu2 }
 0x2e0   : > { %v676_v35 = vmul.f32 %v672_v34, %v629_v32  ;;  %v675_v36 = vmul.f32 %v652_v33, %v609_v31 }
 0x2e2   : > { %v679_v37 = vrot.slane %v676_v35, 4 }
 0x2e4   : > { %v680_v38 = vsel %vm460_vm0, %v675_v36, %v679_v37 }
 0x2e5   : > { %v682_v39 = vmul.f32 %v680_v38, %v1051_v14 }
 0x2e7   : > { %683 = vst [vmem:[%s352_s21] sm:$0xff] %v682_v39 }
 0x2e8   : > { %862 = shalt.err (!%p859_p3)
}
 0x2e9   : > { %784 = dma.vmem_to_hbm [thread:$0]  (%p994_p5), %s699_s22, 128, %s701_s11, %s685_s17  }
 0x2ea PF: > { %p790_p4 = scmp.ge.s32.totalorder %s897_s16, 2  ;;  %s712_s26 = sand.u32 1, %s885_s13  }
 0x2eb   : > { %s713_s20 = scalar_lea.sflag [#allocation3], %s712_s26 }
 0x2ec   : > { %p787_p7 = pnand %p790_p4, %p998_p6 }
 0x2ee   : > { %p788_p8 = pneg %p787_p7 }
 0x2f0   : > { %880 = dma.done.wait (%p788_p8), %s713_s20, 128  }
 0x2f1   : > { %882 = vsyncadd (%p788_p8), %s713_s20, 4294967168  ;;  %s1203_s21 = sld [smem:[#allocation5_spill]]  ;;  %p20_p9 = scmp.ge.s32.totalorder %s981_s19, 4  }
 0x2f2   : > { %s1204_s13 = smov %s889_s14  ;;  %s1205_s14 = smov %s893_s15 }
 0x2f3   : > { %s1207_s16 = smov %s981_s19  ;;  %22 = sbr.rel (!%p20_p9) target bundleno = 3 (0x3), region = 95 }
 0x2f7   : > { %s1206_s15 = smov %s1203_s21 }
 0x2f8   :  { %719 = vsyncpa [#allocation3], 1 }
 0x2f9   :  { %721 = vsyncpa [#allocation3 + $0x1], 1 }

</bundles_post_ra>
